<compile_context>
chip_gen: v5e
topology: v5e:2x2
jax: 0.10.0
libtpu: 0.0.40
codegen_flags: <defaults>
</compile_context>

<pallas_src>
import functools
import math

import jax
import jax.numpy as jnp
import numpy as np
from jax.experimental import pallas as pl
from jax.experimental.pallas import tpu as pltpu


# ----------------------------- shared helpers ------------------------------

def _round_up(x, m):
    return (x + m - 1) // m * m


def _layernorm(v, g, b, eps=1e-5):
    mu = jnp.mean(v, axis=-1, keepdims=True)
    var = jnp.mean((v - mu) ** 2, axis=-1, keepdims=True)
    return (v - mu) * jax.lax.rsqrt(var + eps) * g + b


def _sinusoidal_pe(T, d):
    pos = jnp.arange(T, dtype=jnp.float32)[:, None]
    div = jnp.exp(jnp.arange(0, d, 2, dtype=jnp.float32) * (-math.log(10000.0) / d))
    pe = jnp.zeros((T, d), jnp.float32)
    pe = pe.at[:, 0::2].set(jnp.sin(pos * div))
    pe = pe.at[:, 1::2].set(jnp.cos(pos * div))
    return pe


def _time_embed(x_mark, T, params):
    # patch-index selection (linspace) + embedding-table gather: plain-JAX glue.
    t_mark = x_mark.shape[1]
    idx = jnp.linspace(0.0, t_mark - 1, T).astype(jnp.int32)
    xm = x_mark[:, idx, :]
    # TODO(synk): CryptoTimeEmbedding's ">35 -> subsample to 35" branch is not
    # implemented; it can never fire for shape-consistent inputs (T == lookback <= 35).
    minute = xm[..., 0].astype(jnp.int32)
    hour = xm[..., 1].astype(jnp.int32)
    return params["minute_tab"][minute] + params["hour_tab"][hour]   # (B, T, d)


# ------------------------------- Pallas kernel ------------------------------

def _crypto_embed_kernel(vol_ref,                      # SMEM (B, 1) volatility std
                         x2_ref, time2_ref,            # VMEM row tiles
                         w_tok_ref, vecs_ref, w_gate_ref,
                         out_ref, *, d_real):
    d_pad = out_ref.shape[-1]
    # Mask selecting the d_real "real" channels of the 128-padded lane dim.
    lane_mask = (jax.lax.broadcasted_iota(jnp.int32, (1, d_pad), 1)
                 < d_real).astype(jnp.float32)

    # Packed (8, d_pad) parameter tile: static sublane slices, zero runtime cost.
    b_tok = vecs_ref[0:1, :]
    g_tok = vecs_ref[1:2, :]
    be_tok = vecs_ref[2:3, :]
    w_vol = vecs_ref[3:4, :]
    b_vol = vecs_ref[4:5, :]
    g_vol = vecs_ref[5:6, :]
    be_vol = vecs_ref[6:7, :]
    b_gate = vecs_ref[7:8, :]

    def layernorm(v, g, b, eps=1e-5):
        # LayerNorm over the d_real real channels.  Padded lanes of v are zero
        # (weights/biases zero-padded); padded output lanes come out exactly zero.
        mu = jnp.sum(v, axis=-1, keepdims=True) * (1.0 / d_real)
        c = (v - mu) * lane_mask
        var = jnp.sum(c * c, axis=-1, keepdims=True) * (1.0 / d_real)
        return c * jax.lax.rsqrt(var + eps) * g + b

    # ---- token embedding: Linear(F -> d) on the MXU (bf16 operands, f32 acc)
    tok = jnp.dot(x2_ref[...], w_tok_ref[...],
                  preferred_element_type=jnp.float32) + b_tok
    x_embed = layernorm(tok, g_tok, be_tok)                          # (tile_n, d_pad)

    # base = token embedding + (time + positional) embedding (PE pre-folded in wrapper)
    base = x_embed + time2_ref[...]

    # ---- volatility embedding + gate for this program's volatility-batch row.
    v = vol_ref[pl.program_id(0), 0]                                 # scalar from SMEM
    vol_lin = v * w_vol + b_vol                                      # Linear(1,d): (1, d_pad)
    vol_emb = layernorm(vol_lin, g_vol, be_vol)                      # (1, d_pad)
    gate = jax.nn.sigmoid(
        jnp.dot(vol_emb.astype(w_gate_ref.dtype), w_gate_ref[...],
                preferred_element_type=jnp.float32) + b_gate)        # (1, d_pad)

    # Single fused broadcast-FMA store of the lane-dense output tile.
    out_ref[...] = base * gate + vol_emb


# ------------------------------ wrapper (glue) ------------------------------

def crypto_data_embedding(x, x_mark, params, lookback=11):
    B, T, F_ = x.shape
    d = params["w_tok"].shape[1]
    assert T == lookback, "PyTorch forward only broadcasts when T == lookback"
    N = B * T

    # -------- plain-JAX glue: gathers & tiny scalar reduction --------------------
    time_embed = _time_embed(x_mark, T, params)                      # (B, T, d)
    pe = _sinusoidal_pe(T, d)                                        # (T, d)
    time2 = (time_embed + pe[None]).reshape(N, d)                    # PE folded in

    x_close = x[:, :, -1]                                            # (B, T)
    returns = jnp.concatenate(
        [jnp.zeros((B, 1), jnp.float32), jnp.abs(jnp.diff(x_close, axis=1))], axis=1)
    # T == lookback => single unfold window covering the whole (zero-padded) row,
    # replicate-padded back to length L (all L copies identical).
    vol = jnp.std(returns, axis=1, ddof=1).reshape(B, 1).astype(jnp.float32)
    # TODO(synk): general lookback < T unfold path omitted (the PyTorch forward
    # itself raises a broadcast error in that regime).

    # -------- lane/sublane padding: dense (8,128)-aligned tiles everywhere ---------
    d_pad = _round_up(d, 128)
    f_pad = _round_up(F_, 128)
    tile_n = _round_up(N, 8) if N <= 256 else 256
    n_pad = _round_up(N, tile_n)

    def pad2(a, rows, cols):
        return jnp.pad(a, ((0, rows - a.shape[0]), (0, cols - a.shape[1])))

    # Zero padding of weights/biases guarantees padded channels stay exactly 0.
    x2p = pad2(x.reshape(N, F_), n_pad, f_pad).astype(jnp.bfloat16)
    time2p = pad2(time2, n_pad, d_pad)
    w_tok_p = pad2(params["w_tok"], f_pad, d_pad).astype(jnp.bfloat16)
    w_gate_p = pad2(params["w_gate"], d_pad, d_pad).astype(jnp.bfloat16)
    # All eight (1, d) parameter vectors packed into a single (8, d_pad) tile.
    vecs = jnp.concatenate(
        [pad2(params[k], 1, d_pad)
         for k in ("b_tok", "g_tok", "be_tok", "w_vol", "b_vol",
                   "g_vol", "be_vol", "b_gate")], axis=0)            # (8, d_pad)

    grid = (B, n_pad // tile_n)                 # (vol-batch axis, row-tile axis)

    in_specs = [
        pl.BlockSpec(memory_space=pltpu.MemorySpace.SMEM),           # vol (B, 1)
        pl.BlockSpec((tile_n, f_pad), lambda b, n: (n, 0)),          # x2 rows
        pl.BlockSpec((tile_n, d_pad), lambda b, n: (n, 0)),          # time+pe rows
        pl.BlockSpec((f_pad, d_pad), lambda b, n: (0, 0)),           # w_tok
        pl.BlockSpec((8, d_pad), lambda b, n: (0, 0)),               # packed param vecs
        pl.BlockSpec((d_pad, d_pad), lambda b, n: (0, 0)),           # w_gate
    ]

    out = pl.pallas_call(
        functools.partial(_crypto_embed_kernel, d_real=d),
        out_shape=jax.ShapeDtypeStruct((B, n_pad, d_pad), jnp.float32),
        grid=grid,
        in_specs=in_specs,
        out_specs=pl.BlockSpec((None, tile_n, d_pad), lambda b, n: (b, n, 0)),
        compiler_params=pltpu.CompilerParams(
            dimension_semantics=("parallel", "parallel")),
    )(vol, x2p, time2p, w_tok_p, vecs, w_gate_p)

    # TODO(synk): dropout treated as inference-mode identity.
    return out[:, :N, :d].reshape(B, B, T, d)


# ------------------------------ params & reference --------------------------

def init_params(key, c_in, d_model, patch_size):
    f = patch_size * c_in
    ks = jax.random.split(key, 8)

    def u(k, shape, fan_in):
        lim = 1.0 / math.sqrt(fan_in)
        return jax.random.uniform(k, shape, jnp.float32, -lim, lim)

    return dict(
        w_tok=u(ks[0], (f, d_model), f),             # token Linear weight (transposed)
        b_tok=u(ks[1], (1, d_model), f),
        g_tok=jnp.ones((1, d_model), jnp.float32),   # LayerNorm defaults
        be_tok=jnp.zeros((1, d_model), jnp.float32),
        w_vol=u(ks[2], (1, d_model), 1),             # Linear(1, d) weight (transposed)
        b_vol=u(ks[3], (1, d_model), 1),
        g_vol=jnp.ones((1, d_model), jnp.float32),
        be_vol=jnp.zeros((1, d_model), jnp.float32),
        w_gate=u(ks[4], (d_model, d_model), d_model),
        b_gate=u(ks[5], (1, d_model), d_model),
        minute_tab=jax.random.normal(ks[6], (60, d_model), jnp.float32),
        hour_tab=jax.random.normal(ks[7], (24, d_model), jnp.float32),
    )


def reference(x, x_mark, params, lookback=11):
    """Pure-JAX f32 mirror of the exact PyTorch math (incl. 4-D broadcasting)."""
    B, T, _ = x.shape
    tok = x @ params["w_tok"] + params["b_tok"]
    x_embed = _layernorm(tok, params["g_tok"], params["be_tok"])       # (B,T,d)

    x_close = x[:, :, -1:]                                             # (B,T,1)
    returns = jnp.concatenate(
        [jnp.zeros((B, 1, 1), jnp.float32),
         jnp.abs(x_close[:, 1:] - x_close[:, :-1])], axis=1)           # (B,T,1)
    win = returns[:, None, :, 0]                                       # (B, T-L+1=1, L)
    vol = jnp.std(win, axis=-1, ddof=1)[..., None, None]               # (B,1,1,1)
    vol = jnp.broadcast_to(vol, (B, 1, lookback, 1))                   # replicate pad
    vol_emb = _layernorm(vol * params["w_vol"] + params["b_vol"],
                         params["g_vol"], params["be_vol"])            # (B,1,L,d)
    gate = jax.nn.sigmoid(vol_emb @ params["w_gate"] + params["b_gate"])

    time_embed = _time_embed(x_mark, T, params)                        # (B,T,d)
    pe = _sinusoidal_pe(T, x_embed.shape[-1])[None]                    # (1,T,d)
    out = (x_embed + time_embed + pe) * gate + vol_emb                 # (B,B,T,d)
    return out


# ----------------------------------- main ------------------------------------

if __name__ == "__main__":
    B, c_in, patch_size, d_model, lookback = 2, 4, 16, 32, 11
    T = lookback                      # only shape-consistent config of the forward
    F_ = patch_size * c_in

    key = jax.random.PRNGKey(0)
    kp, kx, km, kh = jax.random.split(key, 4)
    params = init_params(kp, c_in, d_model, patch_size)

    x = jax.random.normal(kx, (B, T, F_), jnp.float32)
    T_mark = 40
    minutes = jax.random.randint(km, (B, T_mark, 1), 0, 60)
    hours = jax.random.randint(kh, (B, T_mark, 1), 0, 24)
    x_mark = jnp.concatenate([minutes, hours], axis=-1).astype(jnp.float32)

    out = crypto_data_embedding(x, x_mark, params, lookback)
    out = jax.block_until_ready(out)

    ref = reference(x, x_mark, params, lookback)
    assert out.shape == (B, B, T, d_model), out.shape
    # Tolerance accounts for bf16 MXU operands (f32 accumulation / LayerNorm / gate).
    np.testing.assert_allclose(np.asarray(out), np.asarray(ref), rtol=2e-2, atol=2e-2)
    print("KERNEL_OK")
</pallas_src>

<mosaic_0001>
module attributes {stable_mosaic.version = 11 : i64} {
  func.func @_crypto_embed_kernel(%arg0: i32, %arg1: i32, %arg2: memref<2x1xf32, #tpu.memory_space<smem>>, %arg3: memref<24x128xbf16, #tpu.memory_space<vmem>>, %arg4: memref<24x128xf32, #tpu.memory_space<vmem>>, %arg5: memref<128x128xbf16, #tpu.memory_space<vmem>>, %arg6: memref<8x128xf32, #tpu.memory_space<vmem>>, %arg7: memref<128x128xbf16, #tpu.memory_space<vmem>>, %arg8: memref<1x24x128xf32, #tpu.memory_space<vmem>>) attributes {dimension_semantics = [#tpu.dimension_semantics<parallel>, #tpu.dimension_semantics<parallel>], iteration_bounds = array<i64: 2, 1>, scalar_prefetch = 0 : i64, scratch_operands = 0 : i64, tpu.core_type = #tpu.core_type<tc>, window_params = [{transform_indices = @transform_0, window_bounds = array<i64: 2, 1>}, {transform_indices = @transform_1, window_bounds = array<i64: 24, 128>}, {transform_indices = @transform_2, window_bounds = array<i64: 24, 128>}, {pipeline_mode = #tpu.pipeline_mode<synchronous>, transform_indices = @transform_3, window_bounds = array<i64: 128, 128>}, {pipeline_mode = #tpu.pipeline_mode<synchronous>, transform_indices = @transform_4, window_bounds = array<i64: 8, 128>}, {pipeline_mode = #tpu.pipeline_mode<synchronous>, transform_indices = @transform_5, window_bounds = array<i64: 128, 128>}, {transform_indices = @transform_6, window_bounds = array<i64: 1, 24, 128>}]} {
    %0 = tpu.iota {dimensions = array<i32: 1>} : vector<1x128xi32>
    %c32_i32 = arith.constant 32 : i32
    %1 = vector.broadcast %c32_i32 : i32 to vector<1x128xi32>
    %2 = arith.cmpi slt, %0, %1 : vector<1x128xi32>
    %3 = arith.extui %2 : vector<1x128xi1> to vector<1x128xi32>
    %4 = arith.sitofp %3 : vector<1x128xi32> to vector<1x128xf32>
    %c0 = arith.constant 0 : index
    %c0_0 = arith.constant 0 : index
    %5 = vector.load %arg6[%c0, %c0_0] : memref<8x128xf32, #tpu.memory_space<vmem>>, vector<1x128xf32>
    %c1 = arith.constant 1 : index
    %c0_1 = arith.constant 0 : index
    %6 = vector.load %arg6[%c1, %c0_1] : memref<8x128xf32, #tpu.memory_space<vmem>>, vector<1x128xf32>
    %c2 = arith.constant 2 : index
    %c0_2 = arith.constant 0 : index
    %7 = vector.load %arg6[%c2, %c0_2] : memref<8x128xf32, #tpu.memory_space<vmem>>, vector<1x128xf32>
    %c3 = arith.constant 3 : index
    %c0_3 = arith.constant 0 : index
    %8 = vector.load %arg6[%c3, %c0_3] : memref<8x128xf32, #tpu.memory_space<vmem>>, vector<1x128xf32>
    %c4 = arith.constant 4 : index
    %c0_4 = arith.constant 0 : index
    %9 = vector.load %arg6[%c4, %c0_4] : memref<8x128xf32, #tpu.memory_space<vmem>>, vector<1x128xf32>
    %c5 = arith.constant 5 : index
    %c0_5 = arith.constant 0 : index
    %10 = vector.load %arg6[%c5, %c0_5] : memref<8x128xf32, #tpu.memory_space<vmem>>, vector<1x128xf32>
    %c6 = arith.constant 6 : index
    %c0_6 = arith.constant 0 : index
    %11 = vector.load %arg6[%c6, %c0_6] : memref<8x128xf32, #tpu.memory_space<vmem>>, vector<1x128xf32>
    %c7 = arith.constant 7 : index
    %c0_7 = arith.constant 0 : index
    %12 = vector.load %arg6[%c7, %c0_7] : memref<8x128xf32, #tpu.memory_space<vmem>>, vector<1x128xf32>
    %c0_8 = arith.constant 0 : index
    %c0_9 = arith.constant 0 : index
    %13 = vector.load %arg3[%c0_8, %c0_9] : memref<24x128xbf16, #tpu.memory_space<vmem>>, vector<24x128xbf16>
    %c0_10 = arith.constant 0 : index
    %c0_11 = arith.constant 0 : index
    %14 = vector.load %arg5[%c0_10, %c0_11] : memref<128x128xbf16, #tpu.memory_space<vmem>>, vector<128x128xbf16>
    %cst = arith.constant dense<0.000000e+00> : vector<24x128xf32>
    %15 = tpu.matmul %13, %14, %cst {dimension_numbers = #tpu.dot_dimension_numbers<[1], [0], [0], [1], [0, 0, 1, 1], [], []>} : vector<24x128xbf16>, vector<128x128xbf16>, vector<24x128xf32> -> vector<24x128xf32>
    %16 = vector.broadcast %5 : vector<1x128xf32> to vector<24x128xf32>
    %17 = arith.addf %15, %16 : vector<24x128xf32>
    %cst_12 = arith.constant dense<0.000000e+00> : vector<24xf32>
    %18 = vector.multi_reduction <add>, %17, %cst_12 [1] : vector<24x128xf32> to vector<24xf32>
    %19 = vector.shape_cast %18 : vector<24xf32> to vector<24x1xf32>
    %cst_13 = arith.constant 3.125000e-02 : f32
    %20 = vector.broadcast %cst_13 : f32 to vector<24x1xf32>
    %21 = arith.mulf %19, %20 : vector<24x1xf32>
    %22 = vector.broadcast %21 : vector<24x1xf32> to vector<24x128xf32>
    %23 = arith.subf %17, %22 : vector<24x128xf32>
    %24 = vector.broadcast %4 : vector<1x128xf32> to vector<24x128xf32>
    %25 = arith.mulf %23, %24 : vector<24x128xf32>
    %26 = arith.mulf %25, %25 : vector<24x128xf32>
    %cst_14 = arith.constant dense<0.000000e+00> : vector<24xf32>
    %27 = vector.multi_reduction <add>, %26, %cst_14 [1] : vector<24x128xf32> to vector<24xf32>
    %28 = vector.shape_cast %27 : vector<24xf32> to vector<24x1xf32>
    %cst_15 = arith.constant 3.125000e-02 : f32
    %29 = vector.broadcast %cst_15 : f32 to vector<24x1xf32>
    %30 = arith.mulf %28, %29 : vector<24x1xf32>
    %cst_16 = arith.constant 9.99999974E-6 : f32
    %31 = vector.broadcast %cst_16 : f32 to vector<24x1xf32>
    %32 = arith.addf %30, %31 : vector<24x1xf32>
    %33 = math.rsqrt %32 : vector<24x1xf32>
    %34 = vector.broadcast %33 : vector<24x1xf32> to vector<24x128xf32>
    %35 = arith.mulf %25, %34 : vector<24x128xf32>
    %36 = vector.broadcast %6 : vector<1x128xf32> to vector<24x128xf32>
    %37 = arith.mulf %35, %36 : vector<24x128xf32>
    %38 = vector.broadcast %7 : vector<1x128xf32> to vector<24x128xf32>
    %39 = arith.addf %37, %38 : vector<24x128xf32>
    %c0_17 = arith.constant 0 : index
    %c0_18 = arith.constant 0 : index
    %40 = vector.load %arg4[%c0_17, %c0_18] : memref<24x128xf32, #tpu.memory_space<vmem>>, vector<24x128xf32>
    %41 = arith.addf %39, %40 : vector<24x128xf32>
    %42 = arith.index_cast %arg0 : i32 to index
    %c0_19 = arith.constant 0 : index
    %43 = memref.load %arg2[%42, %c0_19] : memref<2x1xf32, #tpu.memory_space<smem>>
    %44 = vector.broadcast %43 : f32 to vector<1x128xf32>
    %45 = arith.mulf %44, %8 : vector<1x128xf32>
    %46 = arith.addf %45, %9 : vector<1x128xf32>
    %cst_20 = arith.constant dense<0.000000e+00> : vector<1xf32>
    %47 = vector.multi_reduction <add>, %46, %cst_20 [1] : vector<1x128xf32> to vector<1xf32>
    %48 = vector.shape_cast %47 : vector<1xf32> to vector<1x1xf32>
    %cst_21 = arith.constant 3.125000e-02 : f32
    %49 = vector.broadcast %cst_21 : f32 to vector<1x1xf32>
    %50 = arith.mulf %48, %49 : vector<1x1xf32>
    %51 = vector.broadcast %50 : vector<1x1xf32> to vector<1x128xf32>
    %52 = arith.subf %46, %51 : vector<1x128xf32>
    %53 = arith.mulf %52, %4 : vector<1x128xf32>
    %54 = arith.mulf %53, %53 : vector<1x128xf32>
    %cst_22 = arith.constant dense<0.000000e+00> : vector<1xf32>
    %55 = vector.multi_reduction <add>, %54, %cst_22 [1] : vector<1x128xf32> to vector<1xf32>
    %56 = vector.shape_cast %55 : vector<1xf32> to vector<1x1xf32>
    %cst_23 = arith.constant 3.125000e-02 : f32
    %57 = vector.broadcast %cst_23 : f32 to vector<1x1xf32>
    %58 = arith.mulf %56, %57 : vector<1x1xf32>
    %cst_24 = arith.constant 9.99999974E-6 : f32
    %59 = vector.broadcast %cst_24 : f32 to vector<1x1xf32>
    %60 = arith.addf %58, %59 : vector<1x1xf32>
    %61 = math.rsqrt %60 : vector<1x1xf32>
    %62 = vector.broadcast %61 : vector<1x1xf32> to vector<1x128xf32>
    %63 = arith.mulf %53, %62 : vector<1x128xf32>
    %64 = arith.mulf %63, %10 : vector<1x128xf32>
    %65 = arith.addf %64, %11 : vector<1x128xf32>
    %66 = arith.truncf %65 : vector<1x128xf32> to vector<1x128xbf16>
    %c0_25 = arith.constant 0 : index
    %c0_26 = arith.constant 0 : index
    %67 = vector.load %arg7[%c0_25, %c0_26] : memref<128x128xbf16, #tpu.memory_space<vmem>>, vector<128x128xbf16>
    %cst_27 = arith.constant dense<0.000000e+00> : vector<1x128xf32>
    %68 = tpu.matmul %66, %67, %cst_27 {dimension_numbers = #tpu.dot_dimension_numbers<[1], [0], [0], [1], [0, 0, 1, 1], [], []>} : vector<1x128xbf16>, vector<128x128xbf16>, vector<1x128xf32> -> vector<1x128xf32>
    %69 = arith.addf %68, %12 : vector<1x128xf32>
    %70 = arith.negf %69 : vector<1x128xf32>
    %71 = math.exp %70 : vector<1x128xf32>
    %cst_28 = arith.constant 1.000000e+00 : f32
    %72 = vector.broadcast %cst_28 : f32 to vector<1x128xf32>
    %73 = arith.addf %72, %71 : vector<1x128xf32>
    %74 = arith.divf %72, %73 : vector<1x128xf32>
    %75 = vector.broadcast %74 : vector<1x128xf32> to vector<24x128xf32>
    %76 = arith.mulf %41, %75 : vector<24x128xf32>
    %77 = vector.broadcast %65 : vector<1x128xf32> to vector<24x128xf32>
    %78 = arith.addf %76, %77 : vector<24x128xf32>
    %c0_29 = arith.constant 0 : index
    %c0_30 = arith.constant 0 : index
    %c0_31 = arith.constant 0 : index
    %79 = vector.load %arg8[%c0_29, %c0_30, %c0_31] : memref<1x24x128xf32, #tpu.memory_space<vmem>>, vector<1x24x128xf32>
    %80 = vector.shape_cast %79 : vector<1x24x128xf32> to vector<24x128xf32>
    %81 = vector.shape_cast %78 : vector<24x128xf32> to vector<1x24x128xf32>
    tpu.vector_store %arg8[%c0_29, %c0_30, %c0_31], %81 {strides = array<i32>} : memref<1x24x128xf32, #tpu.memory_space<vmem>>, vector<1x24x128xf32>,
    return
  }
  func.func @transform_0(%arg0: i32, %arg1: i32) -> (i32, i32) {
    %c0_i32 = arith.constant 0 : i32
    %c0_i32_0 = arith.constant 0 : i32
    %c0_i32_1 = arith.constant 0 : i32
    return %c0_i32, %c0_i32_0 : i32, i32
  }
  func.func @transform_1(%arg0: i32, %arg1: i32) -> (i32, i32) {
    %c0_i32 = arith.constant 0 : i32
    %c0_i32_0 = arith.constant 0 : i32
    return %arg1, %c0_i32 : i32, i32
  }
  func.func @transform_2(%arg0: i32, %arg1: i32) -> (i32, i32) {
    %c0_i32 = arith.constant 0 : i32
    %c0_i32_0 = arith.constant 0 : i32
    return %arg1, %c0_i32 : i32, i32
  }
  func.func @transform_3(%arg0: i32, %arg1: i32) -> (i32, i32) {
    %c0_i32 = arith.constant 0 : i32
    %c0_i32_0 = arith.constant 0 : i32
    %c0_i32_1 = arith.constant 0 : i32
    return %c0_i32, %c0_i32_0 : i32, i32
  }
  func.func @transform_4(%arg0: i32, %arg1: i32) -> (i32, i32) {
    %c0_i32 = arith.constant 0 : i32
    %c0_i32_0 = arith.constant 0 : i32
    %c0_i32_1 = arith.constant 0 : i32
    return %c0_i32, %c0_i32_0 : i32, i32
  }
  func.func @transform_5(%arg0: i32, %arg1: i32) -> (i32, i32) {
    %c0_i32 = arith.constant 0 : i32
    %c0_i32_0 = arith.constant 0 : i32
    %c0_i32_1 = arith.constant 0 : i32
    return %c0_i32, %c0_i32_0 : i32, i32
  }
  func.func @transform_6(%arg0: i32, %arg1: i32) -> (i32, i32, i32) {
    %c0_i32 = arith.constant 0 : i32
    %c0_i32_0 = arith.constant 0 : i32
    return %arg0, %arg1, %c0_i32 : i32, i32, i32
  }
}

</mosaic_0001>

<bundles_post_ra>
// kernel: tpu_custom_call.1
= control target key start
LH: loop header
LB: loop body
LE: loop exit
PB: predicated region body
PF: predicated region fallthrough
CT: control target
= control target key end

     0   :  { %s1571_s0 = inlined_call_operand.vmem [shape: f32[2,1], index: 0, kind: input, shape index: {}]   ;;  %s1572_s1 = inlined_call_operand.hbm [shape: bf16[24,128], index: 1, kind: input, shape index: {}]   ;;  %s1573_s2 = inlined_call_operand.hbm [shape: f32[24,128], index: 2, kind: input, shape index: {}]   ;;  %s1574_s3 = inlined_call_operand.hbm [shape: bf16[128,128], index: 3, kind: input, shape index: {}]   ;;  %s1575_s4 = inlined_call_operand.hbm [shape: f32[8,128], index: 4, kind: input, shape index: {}]   ;;  %s1576_s5 = inlined_call_operand.hbm [shape: bf16[128,128], index: 5, kind: input, shape index: {}]   ;;  %s1577_s6 = inlined_call_operand.hbm [shape: f32[2,24,128], index: 6, kind: output, shape index: {}]  }
   0x1   :  { %1579 = sst [smem:[#allocation20_spill]] %s1573_s2 }
   0x2   :  { %1580 = sst [smem:[#allocation21_spill]] %s1575_s4 }
   0x3   :  { %11 = vsyncpa [#allocation5], 0 }
   0x4   :  { %12 = vsyncpa [#allocation3], 0 }
   0x5   :  { %13 = vsyncpa [#allocation8], 0 }
   0x6   :  { %14 = vsyncpa [#allocation11], 0 }
   0x7   :  { %15 = vsyncpa [#allocation4], 0 }
   0x8   :  { %17 = vsyncpa [#allocation4 + $0x1], 0  ;;  %s1392_s21 = smov 0   ;;  %s1394_s22 = smov 0  }
   0x9   :  { %s1396_s23 = smov 0   ;;  %s1398_s24 = smov 0  }
   0xa   :  { %s1400_s25 = smov 0   ;;  %s1402_s26 = smov 0  }
   0xb LB: > { %s828_s27 = sadd.s32 4294967295, %s1342_s26   ;;  %s829_s28 = sadd.s32 4294967294, %s1342_s26   ;;  %s1342_s26 = sphi %s1402_s26, %s23_s26   ;;  %s1338_s25 = sphi %s1400_s25, %s1594_s25   ;;  %s1334_s24 = sphi %s1398_s24, %s1593_s24   ;;  %s1330_s23 = sphi %s1396_s23, %s1592_s23   ;;  %s1326_s22 = sphi %s1394_s22, %s1591_s22   ;;  %s1322_s21 = sphi %s1392_s21, %s1590_s21  }
   0xc   : > { %s35_s29 = sadd.s32 1, %s1338_s25  ;;  %s180_s30 = sadd.s32 1, %s1330_s23 }
   0xd   : > { %p37_p0 = scmp.ge.s32.totalorder %s35_s29, 2  ;;  %p190_p1 = scmp.ne.s32.totalorder %s1330_s23, %s1326_s22 }
   0xe   : > { %p191_p2 = scmp.eq.s32.totalorder %s828_s27, 1  ;;  %p196_p3 = scmp.ne.s32.totalorder %s1326_s22, %s1322_s21 }
   0xf   : > { %s1596_s29 = smov (%p37_p0, %s35_s29), 0  ;;  %p197_p5 = scmp.eq.s32.totalorder %s829_s28, 1 }
  0x10   : > { %1581 = sst [smem:[#allocation19_spill]] %s1596_s29  ;;  %p1432_p4 = por %p191_p2, %p190_p1 }
  0x11   : > { %s175_s8 = ssub.s32 %s1338_s25, %s1596_s29  ;;  %p830_p6 = scmp.ge.s32.totalorder %s1342_s26, 1 }
  0x12   : > { %p178_p7 = scmp.eq.s32.totalorder %s175_s8, 0  ;;  %p1439_p8 = por %p197_p5, %p196_p3 }
  0x13   : > { %p204_p9 = scmp.lt.s32.totalorder %s1342_s26, 3  ;;  %p1451_p11 = scmp.eq.s32.totalorder %s828_s27, 0 }
  0x14   : > { %s1445_s10 = scalar_select %p178_p7, %s1330_s23, %s180_s30  }
  0x15   : > { %p1447_p10 = pnand %p830_p6, %p204_p9  ;;  %s1586_s2 = sld [smem:[#allocation20_spill]] }
  0x16   : > { %s1344_s16 = smov [#allocation7]   ;;  %s1588_s4 = sld [smem:[#allocation21_spill]] }
  0x17   : > { %p971_p12 = pneg %p1447_p10  ;;  %s247_s17 = sshll.u32 %s1344_s16, 4  ;;  %s248_s17 = int_to_ptr.vmem [resolvable:$true] %s247_s17 }
  0x18   : > { %s1345_s28 = smov 128   ;;  %s1346_s30 = smov 8  }
  0x19   : > { %p1462_p13 = pnand %p1451_p11, %p971_p12  ;;  %s1347_s8 = smov [#allocation10]  }
  0x1a   : > { %s276_s13 = sshll.u32 %s1347_s8, 4  ;;  %s1348_s29 = smov [#allocation2]   ;;  %s277_s13 = int_to_ptr.vmem [resolvable:$true] %s276_s13 }
  0x1b   : > { %s245_s15 = sshll.u32 %s1586_s2, 4  ;;  %s216_s2 = sshll.u32 %s1571_s0, 4  ;;  %s246_s15 = int_to_ptr.hbm [resolvable:$true] %s245_s15  ;;  %s217_s2 = int_to_ptr.vmem [resolvable:$true] %s216_s2 }
  0x1c   : > { %s274_s27 = sshll.u32 %s1588_s4, 4  ;;  %s228_s4 = sshll.u32 %s1572_s1, 4  ;;  %s275_s27 = int_to_ptr.hbm [resolvable:$true] %s274_s27  ;;  %s229_s4 = int_to_ptr.hbm [resolvable:$true] %s228_s4 }
  0x1d   : > { %980 = dma.hbm_to_vmem [thread:$0]  (!%p1462_p13), %s246_s15, 384, %s248_s17, [#allocation8], %s1345_s28, %s1345_s28, %s1346_s30  }
  0x1e   : > { %986 = dma.hbm_to_vmem [thread:$0]  (!%p1462_p13), %s275_s27, 128, %s277_s13, [#allocation11]  }
  0x1f   : > { %974 = dma.vmem_to_smem (!%p1462_p13), %s217_s2, 32, %s1348_s29, [#allocation5]  }
  0x20   : > { %s1349_s15 = smov [#allocation6]   ;;  %s259_s8 = sshll.u32 %s1574_s3, 4  ;;  %s260_s8 = int_to_ptr.hbm [resolvable:$true] %s259_s8 }
  0x21   : > { %s230_s17 = sshll.u32 %s1349_s15, 4  ;;  %s1350_s14 = smov 64   ;;  %s231_s17 = int_to_ptr.vmem [resolvable:$true] %s230_s17 }
  0x22   : > { %s1351_s27 = smov 4   ;;  %s1352_s13 = smov [#allocation9]  }
  0x23   : > { %977 = dma.hbm_to_vmem [thread:$0]  (!%p1462_p13), %s229_s4, 192, %s231_s17, [#allocation3], %s1350_s14, %s1350_s14, %s1351_s27  }
  0x24   : > { %s261_s2 = sshll.u32 %s1352_s13, 4  ;;  %s285_s19 = sshll.u32 %s1576_s5, 4  ;;  %s262_s2 = int_to_ptr.vmem [resolvable:$true] %s261_s2  ;;  %s286_s19 = int_to_ptr.hbm [resolvable:$true] %s285_s19 }
  0x25   : > { %983 = dma.hbm_to_vmem [thread:$0]  (!%p1462_p13), %s260_s8, 1024, %s262_s2, [#allocation8], %s1350_s14, %s1350_s14, %s1351_s27  }
  0x26   : > { %s1353_s20 = smov [#allocation12]   ;;  %303 = sbr.rel (%p1447_p10) target bundleno = 504 (0x1f8), region = 44 }
  0x27   : > { %s287_s15 = sshll.u32 %s1353_s20, 4  ;;  %s288_s15 = int_to_ptr.vmem [resolvable:$true] %s287_s15 }
  0x28   : > { %989 = dma.hbm_to_vmem [thread:$0]  (!%p1462_p13), %s286_s19, 1024, %s288_s15, [#allocation11], %s1350_s14, %s1350_s14, %s1351_s27  }
  0x2b   : > { %1301 = dma.done.wait (%p1451_p11), [#allocation5], 32  }
  0x2c   : > { %1303 = vsyncadd (%p1451_p11), [#allocation5], 4294967264 }
  0x2d   : > { %1305 = dma.done.wait (%p1451_p11), [#allocation3], 192  }
  0x2e   : > { %1307 = vsyncadd (%p1451_p11), [#allocation3], 4294967104 }
  0x2f   : > { %1309 = dma.done.wait (%p1451_p11), [#allocation8], 1408  }
  0x30   : > { %1311 = vsyncadd (%p1451_p11), [#allocation8], 4294965888 }
  0x31   : > { %1313 = dma.done.wait (%p1451_p11), [#allocation11], 1152  }
  0x32   : > { %1315 = vsyncadd (%p1451_p11), [#allocation11], 4294966144 }
  0x33   : > { %335 = sfence }
  0x34   : > { %v926_v0 = vld [vmem:[#allocation9 + $0x38] sm:$0xff]  ;;  %s881_s4 = sshll.u32 %s1334_s24, 7  ;;  %v925_v1 = vld [vmem:[#allocation9 + $0x30] sm:$0xff]  ;;  %v366_v2 = vld [vmem:[#allocation10 + $0x3] sm:$0x1]  ;;  %vm549_vm0 = vcmask 1040384   ;;  %v358_v18 = vlaneseq }
  0x35   : > { %s545_s11 = sld [smem:[#allocation2 + %s881_s4]]  ;;  %449 = vmatpush.bf16.msra.mxu0 %v926_v0  ;;  %935 = vmatpush.bf16.msra.mxu2 %v926_v0  ;;  %v924_v3 = vld [vmem:[#allocation9 + $0x28] sm:$0xff]  ;;  %v367_v4 = vld [vmem:[#allocation10 + $0x4] sm:$0x1]  ;;  %v922_v10 = vld [vmem:[#allocation9 + $0x18] sm:$0xff]  ;;  %v1354_v22 = vmov 0.0  }
  0x36   : > { %v923_v8 = vld [vmem:[#allocation9 + $0x20] sm:$0xff]  ;;  %v921_v11 = vld [vmem:[#allocation9 + $0x10] sm:$0xff]  ;;  %v920_v12 = vld [vmem:[#allocation9 + $0x8] sm:$0xff]  ;;  %v359_v19 = vand.u32 127, %v358_v18  ;;  %s352_s12 = sand.u32 1, %s1326_s22   ;;  %s944_s17 = smul.u32 24, %s1334_s24 }
  0x37   : > { %v373_v13 = vld [vmem:[#allocation6 + $0x8] sm:$0xf]  ;;  %v918_v16 = vld [vmem:[#allocation6] sm:$0xff]  ;;  %v932_v38 = vld [vmem:[#allocation12 + $0x28] sm:$0xff]  ;;  %s943_s18 = smul.u32 24, %s352_s12  ;;  %s684_s13 = scalar_lea.sflag [#allocation4], %s352_s12 }
  0x38   : > { %v396_v14 = vunpack.c.l.b16 %v373_v13  ;;  %v919_v15 = vld [vmem:[#allocation9] sm:$0xff]  ;;  %vm360_vm1 = vcmp.lt.s32.totalorder %v359_v19, 32  ;;  %v933_v37 = vld [vmem:[#allocation12 + $0x30] sm:$0xff]  ;;  %v931_v39 = vld [vmem:[#allocation12 + $0x20] sm:$0xff]  ;;  %s697_s8 = scalar_lea.hbm %s1577_s6, %s944_s17  ;;  %s1268_s20 = scalar_lea.hbm %s1577_s6, 48 }
  0x39   : > { %450 = vmatpush.bf16.msra.mxu0 %v925_v1  ;;  %936 = vmatpush.bf16.msra.mxu2 %v925_v1  ;;  %v1513_v23 = vsel %vm360_vm1, 1.0, %v1354_v22  ;;  %v934_v28 = vld [vmem:[#allocation12 + $0x38] sm:$0xff]  ;;  %v929_v41 = vld [vmem:[#allocation12 + $0x10] sm:$0xff]  ;;  %v928_v42 = vld [vmem:[#allocation12 + $0x8] sm:$0xff]  ;;  %s354_s24 = scalar_lea.vmem [#allocation13], %s943_s18  ;;  %s700_s27 = sshll.u32 %s697_s8, 4  ;;  %s701_s27 = int_to_ptr.hbm [resolvable:$true] %s700_s27 }
  0x3a   : > { %v398_v17 = vpack.c.b16 %v396_v14, %v396_v14  ;;  %640 = vmatpush.bf16.msra.mxu1 %v934_v28  ;;  %v1068_v29 = vld [vmem:[#allocation10] ss:$0 sm:$0xff]  ;;  %v927_v43 = vld [vmem:[#allocation12] sm:$0xff]  ;;  %v368_v53 = vld [vmem:[#allocation10 + $0x5] sm:$0x1]  ;;  %s698_s14 = sshll.u32 %s354_s24, 4  ;;  %s699_s14 = int_to_ptr.vmem [resolvable:$true] %s698_s14 }
  0x3b   : > { %v546_v5 = vstv %s545_s11  ;;  %v930_v40 = vld [vmem:[#allocation12 + $0x18] sm:$0xff]  ;;  %s1262_s2 = sshra.s32 %s701_s27, 4  ;;  %s1263_s2 = int_to_ptr.hbm [resolvable:$true] %s1262_s2 }
  0x3c   : > { %v547_v6 = vmul.f32 %v546_v5, %v366_v2  ;;  %v369_v58 = vld [vmem:[#allocation10 + $0x6] sm:$0x1]  ;;  %s1264_s29 = scalar_lea.hbm %s1263_s2, 24  ;;  %p1269_p3 = scmp.lt.s32.totalorder %s1263_s2, %s1577_s6 }
  0x3d   : > { %451 = vmatpush.bf16.msra.mxu0 %v924_v3  ;;  %937 = vmatpush.bf16.msra.mxu2 %v924_v3  ;;  %p1265_p0 = scmp.ne.s32.totalorder %s1263_s2, %s1264_s29  ;;  %p1270_p5 = scmp.lt.s32.totalorder %s1268_s20, %s1264_s29 }
  0x3e   : > { %v548_v7 = vadd.f32 %v547_v6, %v367_v4  ;;  %641 = vmatpush.bf16.msra.mxu1 %v933_v37 }
  0x3f   : > { %p1266_p1 = pnand %p1265_p0, %p1432_p4  ;;  %p1271_p6 = por %p1270_p5, %p1269_p3 }
  0x40   : > { %v550_v9 = vsel %vm549_vm0, %v548_v7, 0.0 }
  0x41   : > { %551 = vadd.xlane.f32.xlu0 %v550_v9  ;;  %452 = vmatpush.bf16.msra.mxu0 %v923_v8  ;;  %p1267_p2 = pneg %p1266_p1 }
  0x42   : > { %938 = vmatpush.bf16.msra.mxu2 %v923_v8  ;;  %642 = vmatpush.bf16.msra.mxu1 %v932_v38 }
  0x43   : > { %p1272_p7 = pnand %p1271_p6, %p1267_p2 }
  0x45   : > { %453 = vmatpush.bf16.msra.mxu0 %v922_v10 }
  0x46   : > { %939 = vmatpush.bf16.msra.mxu2 %v922_v10  ;;  %643 = vmatpush.bf16.msra.mxu1 %v931_v39 }
  0x49   : > { %454 = vmatpush.bf16.msra.mxu0 %v921_v11 }
  0x4a   : > { %940 = vmatpush.bf16.msra.mxu2 %v921_v11  ;;  %644 = vmatpush.bf16.msra.mxu1 %v930_v40 }
  0x4d   : > { %455 = vmatpush.bf16.msra.mxu0 %v920_v12 }
  0x4e   : > { %941 = vmatpush.bf16.msra.mxu2 %v920_v12  ;;  %645 = vmatpush.bf16.msra.mxu1 %v929_v41 }
  0x51   : > { %456 = vmatpush.bf16.msra.mxu0 %v919_v15 }
  0x52   : > { %942 = vmatpush.bf16.msra.mxu2 %v919_v15  ;;  %646 = vmatpush.bf16.msra.mxu1 %v928_v42 }
  0x54   : > { %457 = vmatmul.bf16.vlgmr.msra.gmra.mxu0 %v918_v16  ;;  %v370_v16 = vld [vmem:[#allocation10 + $0x7] sm:$0x1] }
  0x55   : > { %462 = vmatmul.bf16.vlgmr.msra.gmra.mxu2 %v398_v17 }
  0x56   : > { %647 = vmatpush.bf16.msra.mxu1 %v927_v43 }
  0xb4   : > { %v552_v20 = vpop.xlane.xlu0 %551 }
  0xb5   : > { %v553_v21 = vmul.f32 0.03125, %v552_v20 }
  0xb7   : > { %v554_v24 = vsub.f32 %v548_v7, %v553_v21 }
  0xb9   : > { %v555_v25 = vmul.f32 %v1513_v23, %v554_v24 }
  0xbb   : > { %v556_v26 = vmul.f32 %v555_v25, %v555_v25 }
  0xbd   : > { %v557_v27 = vsel %vm549_vm0, %v556_v26, 0.0 }
  0xbe   : > { %558 = vadd.xlane.f32.xlu0 %v557_v27 }
  0xd1   : > { %v458_v30 = vpop.f32.mrf.mxu0 }
  0xd2   : > { %v459_v31 = vadd.f32 %v1068_v29, %v458_v30 }
  0xd4   : > { %467 = vadd.xlane.f32.xlu1 %v459_v31 }
  0xd8   : > { %v463_v32 = vpop.f32.mrf.mxu2 }
  0xd9   : > { %v464_v33 = vadd.f32 %v1068_v29, %v463_v32  ;;  %v460_v34 = vpop.f32.mrf.mxu0 }
  0xda   : > { %v461_v35 = vadd.f32 %v1068_v29, %v460_v34 }
  0xdb   : > { %471 = vadd.xlane.f32.xlu2 %v464_v33 }
  0xdc   : > { %469 = vadd.xlane.f32.xlu1 %v461_v35 }
  0xe0   : > { %v465_v36 = vpop.f32.mrf.mxu2 }
 0x131   : > { %v559_v44 = vpop.xlane.xlu0 %558 }
 0x132   : > { %v560_v45 = vmul.f32 0.03125, %v559_v44 }
 0x134   : > { %v561_v46 = vadd.f32 1e-05, %v560_v45  ;;  %v1069_v45 = vld [vmem:[#allocation10 + $0x1] ss:$0 sm:$0xff] }
 0x136   : > { %1071 = vrsqrt.f32 %v561_v46  ;;  %vm568_vm3 = vweird.f32 %v561_v46 }
 0x13c   : > { %v1072_v47 = vpop.eup %1071 }
 0x13d   : > { %v563_v48 = vmul.f32 %v1072_v47, %v561_v46  ;;  %vm569_vm2 = vweird.f32 %v1072_v47 }
 0x13e   : > { %vm570_vm4 = vmor %vm568_vm3, %vm569_vm2 }
 0x13f   : > { %v564_v49 = vmul.f32 %v1072_v47, %v563_v48 }
 0x141   : > { %v565_v50 = vmul.f32 0.5, %v564_v49 }
 0x143   : > { %v566_v51 = vsub.f32 1.5, %v565_v50 }
 0x145   : > { %v567_v52 = vmul.f32 %v1072_v47, %v566_v51 }
 0x147   : > { %v571_v54 = vsel %vm570_vm4, %v1072_v47, %v567_v52  ;;  %v468_v55 = vpop.xlane.xlu1 %467 }
 0x148   : > { %v572_v56 = vmul.f32 %v571_v54, %v555_v25  ;;  %v473_v57 = vmul.f32 0.03125, %v468_v55  ;;  %v1070_v54 = vld [vmem:[#allocation10 + $0x2] ss:$0 sm:$0xff] }
 0x14a   : > { %v573_v59 = vmul.f32 %v572_v56, %v368_v53  ;;  %v476_v60 = vsub.f32 %v459_v31, %v473_v57 }
 0x14c   : > { %v1517_v61 = vadd.f32 %v573_v59, %v369_v58  ;;  %v1520_v62 = vmul.f32 %v1513_v23, %v476_v60 }
 0x14e   : > { %v472_v63 = vpop.xlane.xlu2 %471  ;;  %v575_v0 = vpack.c.bf16 %v1517_v61, %v1517_v61  ;;  %v482_v2 = vmul.f32 %v1520_v62, %v1520_v62 }
 0x14f   : > { %v475_v1 = vmul.f32 0.03125, %v472_v63  ;;  %v470_v3 = vpop.xlane.xlu1 %469  ;;  %v538_v63 = vld [vmem:[#allocation7] sm:$0xff] }
 0x150   : > { %648 = vmatmul.bf16.vlgmr.msra.gmra.mxu1 %v575_v0  ;;  %v474_v5 = vmul.f32 0.03125, %v470_v3  ;;  %485 = vadd.xlane.f32.xlu2 %v482_v2 }
 0x151   : > { %v478_v4 = vsub.f32 %v464_v33, %v475_v1 }
 0x152   : > { %v477_v6 = vsub.f32 %v461_v35, %v474_v5 }
 0x153   : > { %v481_v7 = vmul.f32 %v1513_v23, %v478_v4  ;;  %v540_v4 = vld [vmem:[#allocation7 + $0x10] sm:$0xff] }
 0x154   : > { %v480_v9 = vmul.f32 %v1513_v23, %v477_v6  ;;  %v539_v6 = vld [vmem:[#allocation7 + $0x8] sm:$0xff] }
 0x155   : > { %v484_v8 = vmul.f32 %v481_v7, %v481_v7 }
 0x156   : > { %v483_v10 = vmul.f32 %v480_v9, %v480_v9 }
 0x157   : > { %489 = vadd.xlane.f32.xlu1 %v484_v8 }
 0x158   : > { %487 = vadd.xlane.f32.xlu0 %v483_v10 }
 0x1c3   : > { %v486_v11 = vpop.xlane.xlu2 %485 }
 0x1c4   : > { %v491_v12 = vmul.f32 0.03125, %v486_v11 }
 0x1c6   : > { %v494_v13 = vadd.f32 1e-05, %v491_v12 }
 0x1c8   : > { %1073 = vrsqrt.f32 %v494_v13  ;;  %vm503_vm6 = vweird.f32 %v494_v13 }
 0x1ca   : > { %v490_v14 = vpop.xlane.xlu1 %489 }
 0x1cb   : > { %v493_v15 = vmul.f32 0.03125, %v490_v14  ;;  %v488_v17 = vpop.xlane.xlu0 %487 }
 0x1cc   : > { %v492_v20 = vmul.f32 0.03125, %v488_v17 }
 0x1cd   : > { %v496_v18 = vadd.f32 1e-05, %v493_v15  ;;  %v649_v19 = vpop.f32.mrf.mxu1 }
 0x1ce   : > { %v650_v21 = vadd.f32 %v649_v19, %v370_v16  ;;  %v1074_v22 = vpop.eup %1073  ;;  %v495_v24 = vadd.f32 1e-05, %v492_v20 }
 0x1cf   : > { %1075 = vrsqrt.f32 %v496_v18  ;;  %v498_v25 = vmul.f32 %v1074_v22, %v494_v13  ;;  %vm504_vm5 = vweird.f32 %v1074_v22  ;;  %vm523_vm9 = vweird.f32 %v496_v18 }
 0x1d0   : > { %v914_v23 = vmul.f32 -1.442695, %v650_v21  ;;  %1077 = vrsqrt.f32 %v495_v24  ;;  %vm505_vm7 = vmor %vm503_vm6, %vm504_vm5  ;;  %vm513_vm12 = vweird.f32 %v495_v24  ;;  %v676_v13 = vperm.slane %v1517_v61, 0 }
 0x1d1   : > { %v499_v26 = vmul.f32 %v1074_v22, %v498_v25 }
 0x1d2   : > { %1079 = vpow2.f32 %v914_v23 }
 0x1d3   : > { %v500_v27 = vmul.f32 0.5, %v499_v26 }
 0x1d5   : > { %v1076_v28 = vpop.eup %1075  ;;  %v651_v29 = vpop.f32.mrf.mxu1  ;;  %v501_v30 = vsub.f32 1.5, %v500_v27 }
 0x1d6   : > { %v518_v31 = vmul.f32 %v1076_v28, %v496_v18  ;;  %v1078_v32 = vpop.eup %1077  ;;  %vm524_vm8 = vweird.f32 %v1076_v28 }
 0x1d7   : > { %v508_v35 = vmul.f32 %v1078_v32, %v495_v24  ;;  %v502_v36 = vmul.f32 %v1074_v22, %v501_v30  ;;  %vm514_vm10 = vweird.f32 %v1078_v32  ;;  %vm525_vm11 = vmor %vm523_vm9, %vm524_vm8 }
 0x1d8   : > { %v1080_v33 = vpop.eup %1079  ;;  %v519_v34 = vmul.f32 %v1076_v28, %v518_v31  ;;  %vm515_vm13 = vmor %vm513_vm12, %vm514_vm10 }
 0x1d9   : > { %v656_v37 = vadd.f32 1.0, %v1080_v33  ;;  %v509_v39 = vmul.f32 %v1078_v32, %v508_v35  ;;  %v506_v42 = vsel %vm505_vm7, %v1074_v22, %v502_v36 }
 0x1da   : > { %v520_v38 = vmul.f32 0.5, %v519_v34  ;;  %v527_v46 = vmul.f32 %v506_v42, %v1520_v62 }
 0x1db   : > { %1081 = vrcp.f32 %v656_v37  ;;  %v510_v41 = vmul.f32 0.5, %v509_v39  ;;  %v668_v58 = vand.u32 2147483648, %v656_v37  ;;  %v666_v62 = vand.u32 2147483647, %v656_v37 }
 0x1dc   : > { %v521_v40 = vsub.f32 1.5, %v520_v38  ;;  %v531_v55 = vmul.f32 %v1069_v45, %v527_v46  ;;  %vm662_vm15 = vweird.f32 %v656_v37 }
 0x1dd   : > { %v511_v44 = vsub.f32 1.5, %v510_v41  ;;  %v669_v5 = vor.u32 1.1754944e-38, %v668_v58  ;;  %vm667_vm1 = vcmp.eq.f32.partialorder %v666_v62, 8.507059e+37 }
 0x1de   : > { %v522_v43 = vmul.f32 %v1076_v28, %v521_v40  ;;  %v535_v0 = vadd.f32 %v1070_v54, %v531_v55 }
 0x1df   : > { %v512_v48 = vmul.f32 %v1078_v32, %v511_v44 }
 0x1e0   : > { %v526_v47 = vsel %vm525_vm11, %v1076_v28, %v522_v43 }
 0x1e1   : > { %v1082_v49 = vpop.eup %1081  ;;  %v529_v50 = vmul.f32 %v526_v47, %v481_v7  ;;  %v516_v52 = vsel %vm515_vm13, %v1078_v32, %v512_v48 }
 0x1e2   : > { %v658_v51 = vmul.f32 %v1082_v49, %v656_v37  ;;  %v528_v53 = vmul.f32 %v516_v52, %v480_v9  ;;  %vm663_vm14 = vweird.f32 %v1082_v49  ;;  %v541_v9 = vadd.f32 %v538_v63, %v535_v0 }
 0x1e3   : > { %v533_v56 = vmul.f32 %v1069_v45, %v529_v50  ;;  %vm664_vm0 = vmor %vm662_vm15, %vm663_vm14 }
 0x1e4   : > { %v659_v57 = vsub.f32 1.0, %v658_v51  ;;  %v532_v59 = vmul.f32 %v1069_v45, %v528_v53 }
 0x1e5   : > { %v537_v1 = vadd.f32 %v1070_v54, %v533_v56 }
 0x1e6   : > { %v660_v60 = vmul.f32 %v1082_v49, %v659_v57  ;;  %v536_v3 = vadd.f32 %v1070_v54, %v532_v59 }
 0x1e7   : > { %v543_v10 = vadd.f32 %v540_v4, %v537_v1 }
 0x1e8   : > { %v661_v2 = vadd.f32 %v1082_v49, %v660_v60  ;;  %v542_v12 = vadd.f32 %v539_v6, %v536_v3 }
 0x1ea   : > { %v665_v7 = vsel %vm664_vm0, %v1082_v49, %v661_v2 }
 0x1eb   : > { %v670_v8 = vsel %vm667_vm1, %v669_v5, %v665_v7 }
 0x1ec   : > { %v672_v11 = vperm.slane %v670_v8, 0 }
 0x1ee   : > { %v674_v14 = vmul.f32 %v672_v11, %v542_v12  ;;  %v673_v15 = vmul.f32 %v672_v11, %v541_v9  ;;  %v675_v16 = vmul.f32 %v672_v11, %v543_v10 }
 0x1f0   : > { %v677_v17 = vadd.f32 %v676_v13, %v673_v15  ;;  %v678_v18 = vadd.f32 %v676_v13, %v674_v14  ;;  %v679_v19 = vadd.f32 %v676_v13, %v675_v16 }
 0x1f2   : > { %680 = vst [vmem:[%s354_s24] sm:$0xff] %v677_v17 }
 0x1f3   : > { %681 = vst [vmem:[%s354_s24 + $0x8] sm:$0xff] %v678_v18 }
 0x1f4   : > { %682 = vst [vmem:[%s354_s24 + $0x10] sm:$0xff] %v679_v19 }
 0x1f5   : > { %1275 = shalt.err (!%p1272_p7)
}
 0x1f6   : > { %s1355_s11 = smov 128   ;;  %s1356_s12 = smov 8  }
 0x1f7   : > { %969 = dma.vmem_to_hbm [thread:$0]  (%p1432_p4), %s699_s14, 384, %s701_s27, %s684_s13, %s1355_s11, %s1355_s11, %s1356_s12  }
 0x1f8 PF: > { %p1006_p9 = scmp.ge.s32.totalorder %s1342_s26, 2  ;;  %s715_s18 = sand.u32 1, %s1322_s21  }
 0x1f9   : > { %s716_s17 = scalar_lea.sflag [#allocation4], %s715_s18 }
 0x1fa   : > { %p991_p10 = pnand %p1006_p9, %p1439_p8 }
 0x1fc   : > { %p992_p11 = pneg %p991_p10 }
 0x1fe   : > { %1317 = dma.done.wait (%p992_p11), %s716_s17, 384  }
 0x1ff   : > { %1319 = vsyncadd (%p992_p11), %s716_s17, 4294966912  ;;  %s23_s26 = sadd.s32 1, %s1342_s26   ;;  %s1589_s7 = sld [smem:[#allocation19_spill]] }
 0x200   : > { %p20_p12 = scmp.ge.s32.totalorder %s23_s26, 4   ;;  %s1590_s21 = smov %s1326_s22 }
 0x201   : > { %s1591_s22 = smov %s1330_s23  ;;  %s1592_s23 = smov %s1445_s10 }
 0x202   : > { %s1593_s24 = smov %s1338_s25  ;;  %22 = sbr.rel (!%p20_p12) target bundleno = 11 (0xb), region = 104 }
 0x205   : > { %s1594_s25 = smov %s1589_s7 }
 0x207   :  { %722 = vsyncpa [#allocation3], 1 }
 0x208   :  { %724 = vsyncpa [#allocation3 + $0x1], 1 }
 0x209   :  { %725 = vsyncpa [#allocation8], 1 }
 0x20a   :  { %726 = vsyncpa [#allocation11], 1 }
 0x20b   :  { %727 = vsyncpa [#allocation4], 1 }
 0x20c   :  { %729 = vsyncpa [#allocation4 + $0x1], 1 }
 0x20d   :  { %730 = vsyncpa [#allocation5], 1 }
 0x20e   :  { %732 = vsyncpa [#allocation5 + $0x1], 1 }

</bundles_post_ra>
